<compile_context>
chip_gen: v6e
topology: v6e:2x2x1
jax: 0.10.0
libtpu: 0.0.40
codegen_flags: <defaults>
</compile_context>

<pallas_src>
import jax
import jax.numpy as jnp
from jax import lax
from jax.experimental import pallas as pl
from jax.experimental.pallas import tpu as pltpu


def _round_up(x, m):
    return ((x + m - 1) // m) * m


def _mlp_proj_kernel(x_ref, w_ref, b_ref, o_ref):
    # x_ref: (C, t_hw)  channels-major activation tile (transpose fused here)
    # w_ref: (C, E)     weight, already transposed to (in, out)
    # b_ref: (1, E)     bias, float32
    # o_ref: (t_hw, E)  output tile
    acc = lax.dot_general(
        x_ref[...], w_ref[...],
        dimension_numbers=(((0,), (0,)), ((), ())),   # contract the C axis
        preferred_element_type=jnp.float32,
    )                                                  # (t_hw, E) in f32
    o_ref[...] = (acc + b_ref[...]).astype(o_ref.dtype)


def mlp_forward(x_nchw, weight, bias, *, t_hw=512, use_bf16=True):
    """SegFormer MLP forward.

    Args:
      x_nchw: (B, C, H, W) input, NCHW like PyTorch.
      weight: (E, C) linear weight, PyTorch convention (out_features, in_features).
      bias:   (E,)   linear bias.
      t_hw:   spatial (HW) tile width; clamped / padded internally.
      use_bf16: cast matmul operands to bf16 (f32 accumulation + f32 bias add).

    Returns:
      (B, H*W, E) output, matching `self.proj(x.flatten(2).transpose(1, 2))`.
    """
    B, C, H, W = x_nchw.shape
    E = weight.shape[0]
    HW = H * W

    out_dtype = x_nchw.dtype
    op_dtype = jnp.bfloat16 if use_bf16 else x_nchw.dtype

    # flatten(2): (B, C, HW). The transpose(1, 2) is folded into the kernel's
    # dot_general, so no separate HBM transpose pass is emitted by XLA.
    x3d = x_nchw.reshape(B, C, HW)

    # Lane-dense tile along HW; pad HW so the grid divides evenly (handles
    # odd resolutions like HW = 49, 196 without shrinking the tile).
    t_hw = min(t_hw, _round_up(HW, 128))
    hw_pad = _round_up(HW, t_hw)
    if hw_pad != HW:
        x3d = jnp.pad(x3d, ((0, 0), (0, 0), (0, hw_pad - HW)))
    x3d = x3d.astype(op_dtype)

    w_t = weight.T.astype(op_dtype)            # (C, E)
    b2d = bias.reshape(1, E).astype(jnp.float32)

    grid = (B, hw_pad // t_hw)

    flops = 2 * B * hw_pad * C * E
    bytes_accessed = (
        x3d.size * x3d.dtype.itemsize
        + w_t.size * w_t.dtype.itemsize
        + b2d.size * b2d.dtype.itemsize
        + B * hw_pad * E * jnp.dtype(out_dtype).itemsize
    )

    out = pl.pallas_call(
        _mlp_proj_kernel,
        out_shape=jax.ShapeDtypeStruct((B, hw_pad, E), out_dtype),
        grid_spec=pltpu.PrefetchScalarGridSpec(
            num_scalar_prefetch=0,
            grid=grid,
            in_specs=[
                # (C, t_hw) activation tile; batch dim squeezed out.
                pl.BlockSpec((None, C, t_hw), lambda b, j: (b, 0, j)),
                # Full weight, resident across the grid.
                pl.BlockSpec((C, E), lambda b, j: (0, 0)),
                # Bias.
                pl.BlockSpec((1, E), lambda b, j: (0, 0)),
            ],
            out_specs=pl.BlockSpec((None, t_hw, E), lambda b, j: (b, j, 0)),
        ),
        compiler_params=pltpu.CompilerParams(
            dimension_semantics=("parallel", "parallel"),
        ),
        cost_estimate=pl.CostEstimate(
            flops=flops, transcendentals=0, bytes_accessed=bytes_accessed),
    )(x3d, w_t, b2d)

    if hw_pad != HW:
        out = out[:, :HW, :]
    return out


if __name__ == "__main__":
    # Small shapes consistent with the module's forward:
    #   batch=2, input_dim(C)=32, spatial H=W=8, embed_dim(E)=256
    # (E kept a multiple of 128 so output stores are lane-dense, matching
    #  real SegFormer embed dims of 256/768.)
    B, C, H, W, E = 2, 32, 8, 8, 256

    key = jax.random.PRNGKey(0)
    kx, kw, kb = jax.random.split(key, 3)

    x = jax.random.normal(kx, (B, C, H, W), dtype=jnp.float32)
    # nn.Linear(input_dim=C, embed_dim=E): weight (out, in), bias (out,)
    weight = jax.random.normal(kw, (E, C), dtype=jnp.float32) * 0.02
    bias = jax.random.normal(kb, (E,), dtype=jnp.float32) * 0.02

    # Reference in plain JAX (same math as the PyTorch module).
    x_ref = jnp.transpose(x.reshape(B, C, H * W), (0, 2, 1))  # (B, HW, C)
    ref = x_ref @ weight.T + bias                              # (B, HW, E)

    # bf16-operand path (default, production config).
    out_bf16 = jax.block_until_ready(mlp_forward(x, weight, bias))
    assert out_bf16.shape == (B, H * W, E)
    assert out_bf16.dtype == x.dtype
    assert jnp.allclose(out_bf16, ref, atol=1e-2, rtol=1e-2)

    # f32-operand path (exact check).
    out_f32 = jax.block_until_ready(mlp_forward(x, weight, bias, use_bf16=False))
    assert out_f32.shape == (B, H * W, E)
    assert jnp.allclose(out_f32, ref, atol=1e-5, rtol=1e-5)

    print("KERNEL_OK")
</pallas_src>

<mosaic_0001>
module attributes {stable_mosaic.version = 11 : i64} {
  func.func @_mlp_proj_kernel(%arg0: i32, %arg1: i32, %arg2: memref<1x32x128xbf16, #tpu.memory_space<vmem>>, %arg3: memref<32x256xbf16, #tpu.memory_space<vmem>>, %arg4: memref<1x256xf32, #tpu.memory_space<vmem>>, %arg5: memref<1x128x256xf32, #tpu.memory_space<vmem>>) attributes {dimension_semantics = [#tpu.dimension_semantics<parallel>, #tpu.dimension_semantics<parallel>], iteration_bounds = array<i64: 2, 1>, scalar_prefetch = 0 : i64, scratch_operands = 0 : i64, tpu.core_type = #tpu.core_type<tc>, window_params = [{transform_indices = @transform_0, window_bounds = array<i64: 1, 32, 128>}, {pipeline_mode = #tpu.pipeline_mode<synchronous>, transform_indices = @transform_1, window_bounds = array<i64: 32, 256>}, {pipeline_mode = #tpu.pipeline_mode<synchronous>, transform_indices = @transform_2, window_bounds = array<i64: 1, 256>}, {transform_indices = @transform_3, window_bounds = array<i64: 1, 128, 256>}]} {
    %c0 = arith.constant 0 : index
    %c0_0 = arith.constant 0 : index
    %c0_1 = arith.constant 0 : index
    %0 = vector.load %arg2[%c0, %c0_0, %c0_1] : memref<1x32x128xbf16, #tpu.memory_space<vmem>>, vector<1x32x128xbf16>
    %1 = vector.shape_cast %0 : vector<1x32x128xbf16> to vector<32x128xbf16>
    %c0_2 = arith.constant 0 : index
    %c0_3 = arith.constant 0 : index
    %2 = vector.load %arg3[%c0_2, %c0_3] : memref<32x256xbf16, #tpu.memory_space<vmem>>, vector<32x256xbf16>
    %cst = arith.constant dense<0.000000e+00> : vector<128x256xf32>
    %3 = tpu.matmul %1, %2, %cst {dimension_numbers = #tpu.dot_dimension_numbers<[0], [0], [1], [1], [0, 1, 1, 1], [], []>} : vector<32x128xbf16>, vector<32x256xbf16>, vector<128x256xf32> -> vector<128x256xf32>
    %c0_4 = arith.constant 0 : index
    %c0_5 = arith.constant 0 : index
    %4 = vector.load %arg4[%c0_4, %c0_5] : memref<1x256xf32, #tpu.memory_space<vmem>>, vector<1x256xf32>
    %5 = vector.broadcast %4 : vector<1x256xf32> to vector<128x256xf32>
    %6 = arith.addf %3, %5 : vector<128x256xf32>
    %c0_6 = arith.constant 0 : index
    %c0_7 = arith.constant 0 : index
    %c0_8 = arith.constant 0 : index
    %7 = vector.load %arg5[%c0_6, %c0_7, %c0_8] : memref<1x128x256xf32, #tpu.memory_space<vmem>>, vector<1x128x256xf32>
    %8 = vector.shape_cast %7 : vector<1x128x256xf32> to vector<128x256xf32>
    %9 = vector.shape_cast %6 : vector<128x256xf32> to vector<1x128x256xf32>
    tpu.vector_store %arg5[%c0_6, %c0_7, %c0_8], %9 {strides = array<i32>} : memref<1x128x256xf32, #tpu.memory_space<vmem>>, vector<1x128x256xf32>,
    return
  }
  func.func @transform_0(%arg0: i32, %arg1: i32) -> (i32, i32, i32) {
    %c0_i32 = arith.constant 0 : i32
    %c0_i32_0 = arith.constant 0 : i32
    return %arg0, %c0_i32, %arg1 : i32, i32, i32
  }
  func.func @transform_1(%arg0: i32, %arg1: i32) -> (i32, i32) {
    %c0_i32 = arith.constant 0 : i32
    %c0_i32_0 = arith.constant 0 : i32
    %c0_i32_1 = arith.constant 0 : i32
    return %c0_i32, %c0_i32_0 : i32, i32
  }
  func.func @transform_2(%arg0: i32, %arg1: i32) -> (i32, i32) {
    %c0_i32 = arith.constant 0 : i32
    %c0_i32_0 = arith.constant 0 : i32
    %c0_i32_1 = arith.constant 0 : i32
    return %c0_i32, %c0_i32_0 : i32, i32
  }
  func.func @transform_3(%arg0: i32, %arg1: i32) -> (i32, i32, i32) {
    %c0_i32 = arith.constant 0 : i32
    %c0_i32_0 = arith.constant 0 : i32
    return %arg0, %arg1, %c0_i32 : i32, i32, i32
  }
}

</mosaic_0001>

<bundles_post_ra>
// kernel: tpu_custom_call.1
= control target key start
LH: loop header
LB: loop body
LE: loop exit
PB: predicated region body
PF: predicated region fallthrough
CT: control target
= control target key end

     0   :  { %8 = vsyncpa [#allocation3], 0  ;;  %s1133_s0 = inlined_call_operand.hbm [shape: bf16[2,32,128], index: 0, kind: input, shape index: {}]   ;;  %s1134_s1 = inlined_call_operand.hbm [shape: bf16[32,256], index: 1, kind: input, shape index: {}]   ;;  %s1135_s2 = inlined_call_operand.vmem [shape: f32[1,256], index: 2, kind: input, shape index: {}]   ;;  %s1136_s3 = inlined_call_operand.hbm [shape: f32[2,128,256], index: 3, kind: output, shape index: {}]  }
   0x1   :  { %10 = vsyncpa [#allocation3 + $0x1], 0 }
   0x2   :  { %11 = vsyncpa [#allocation6], 0 }
   0x3   :  { %12 = vsyncpa [#allocation4], 0 }
   0x4   :  { %14 = vsyncpa [#allocation4 + $0x1], 0  ;;  %s869_s12 = smov 0   ;;  %s871_s13 = smov 0  }
   0x5   :  { %s873_s14 = smov 0   ;;  %s875_s15 = smov 0  }
   0x6   :  { %s877_s16 = smov 0   ;;  %s879_s17 = smov 0  }
   0x7 LB: > { %s574_s18 = sadd.s32 4294967295, %s837_s17   ;;  %s575_s19 = sadd.s32 4294967294, %s837_s17   ;;  %s837_s17 = sphi %s879_s17, %s20_s17   ;;  %s833_s16 = sphi %s877_s16, %s1154_s16   ;;  %s829_s15 = sphi %s875_s15, %s1153_s15   ;;  %s825_s14 = sphi %s873_s14, %s1152_s14   ;;  %s821_s13 = sphi %s871_s13, %s1151_s13   ;;  %s817_s12 = sphi %s869_s12, %s1150_s12  }
   0x8   : > { %p54_p0 = scmp.ne.s32.totalorder %s821_s13, %s817_s12  ;;  %p903_p1 = scmp.eq.s32.totalorder %s574_s18, 0 }
   0x9   : > { %p907_p2 = scmp.eq.s32.totalorder %s574_s18, 1  ;;  %p128_p3 = scmp.eq.s32.totalorder %s575_s19, 1 }
   0xa   : > { %p913_p4 = por %p903_p1, %p54_p0  ;;  %p576_p5 = scmp.ge.s32.totalorder %s837_s17, 1 }
   0xb   : > { %p918_p6 = por %p128_p3, %p54_p0  ;;  %p135_p7 = scmp.lt.s32.totalorder %s837_s17, 3 }
   0xc   : > { %s1140_s22 = scalar_select %p913_p4, 1, 0 }
   0xd   : > { %s1141_s23 = scalar_select %p918_p6, 1, 0 }
   0xe   : > { %p923_p8 = pnand %p576_p5, %p135_p7  ;;  %s839_s25 = smov [#allocation5]  }
   0xf   : > { %s147_s26 = sshll.u32 %s839_s25, 4  ;;  %s32_s28 = sadd.s32 1, %s833_s16  ;;  %s148_s26 = int_to_ptr.vmem [resolvable:$true] %s147_s26 }
  0x10   : > { %p619_p9 = pneg %p923_p8  ;;  %s710_s29 = scalar_lea.vmem %s148_s26, 512 }
  0x11   : > { %p711_p13 = scmp.ne.s32.totalorder %s148_s26, %s710_s29  ;;  %p718_p5 = scmp.lt.s32.totalorder %s148_s26, %s148_s26 }
  0x12   : > { %p932_p11 = pnand %p619_p9, %p903_p1  ;;  %p719_p7 = scmp.lt.s32.totalorder %s710_s29, %s710_s29 }
  0x14   : > { %p701_p12 = pneg %p932_p11  ;;  %p720_p6 = por %p719_p7, %p718_p5 }
  0x16   : > { %p713_p0 = pnand %p711_p13, %p701_p12 }
  0x18   : > { %p714_p3 = pneg %p713_p0 }
  0x1a   : > { %p721_p4 = pnand %p720_p6, %p714_p3 }
  0x1c   : > { %724 = shalt.err (!%p721_p4)
}
  0x1d   : > { %s840_s30 = smov 128   ;;  %s841_s4 = smov 8  }
  0x1e   : > { %622 = dma.hbm_to_vmem [thread:$0]  (!%p932_p11), %s1134_s1, 512, %s148_s26, [#allocation6], %s840_s30, %s840_s30, %s841_s4  }
  0x1f   : > { %p34_p6 = scmp.ge.s32.totalorder %s32_s28, 2  ;;  %s41_s7 = sadd.s32 1, %s825_s14 }
  0x20   : > { %p48_p4 = scmp.ne.s32.totalorder %s825_s14, %s821_s13  ;;  %p49_p9 = scmp.eq.s32.totalorder %s837_s17, 0 }
  0x21   : > { %s1156_s28 = smov (%p34_p6, %s32_s28), 0  ;;  %p632_p0 = scmp.lt.s32.totalorder %s837_s17, 2 }
  0x22   : > { %p950_p12 = por %p49_p9, %p48_p4  ;;  %p956_p13 = por %p907_p2, %p48_p4 }
  0x23   : > { %s36_s10 = ssub.s32 %s833_s16, %s1156_s28  ;;  %s164_s11 = sand.u32 1, %s825_s14  }
  0x24   : > { %p39_p11 = scmp.eq.s32.totalorder %s36_s10, 0  ;;  %s579_s18 = sshll.u32 %s164_s11, 4 }
  0x25   : > { %s605_s25 = sshll.u32 %s833_s16, 8  ;;  %s168_s30 = scalar_lea.vmem [#allocation2], %s579_s18 }
  0x26   : > { %s965_s19 = scalar_select %p39_p11, %s825_s14, %s41_s7  }
  0x27   : > { %s175_s29 = scalar_lea.hbm %s1133_s0, %s605_s25  ;;  %s176_s4 = sshll.u32 %s168_s30, 4  ;;  %s177_s4 = int_to_ptr.vmem [resolvable:$true] %s176_s4 }
  0x28   : > { %p973_p2 = pnand %p632_p0, %p950_p12  ;;  %s165_s5 = scalar_lea.sflag [#allocation3], %s164_s11 }
  0x29   : > { %s738_s6 = scalar_lea.vmem %s177_s4, 256  ;;  %s842_s7 = smov [#allocation2]  }
  0x2a   : > { %p727_p3 = pneg %p973_p2  ;;  %p739_p5 = scmp.ne.s32.totalorder %s177_s4, %s738_s6 }
  0x2b   : > { %s743_s10 = sshll.u32 %s842_s7, 4  ;;  %s744_s10 = int_to_ptr.vmem [resolvable:$false] %s743_s10 }
  0x2c   : > { %p741_p7 = pnand %p739_p5, %p727_p3  ;;  %s745_s25 = scalar_lea.vmem %s744_s10, 512 }
  0x2d   : > { %p746_p4 = scmp.lt.s32.totalorder %s177_s4, %s744_s10  ;;  %p747_p9 = scmp.lt.s32.totalorder %s745_s25, %s738_s6 }
  0x2e   : > { %p742_p6 = pneg %p741_p7 }
  0x2f   : > { %p748_p11 = por %p747_p9, %p746_p4 }
  0x31   : > { %p749_p10 = pnand %p748_p11, %p742_p6 }
  0x33   : > { %752 = shalt.err (!%p749_p10)
}
  0x34   : > { %s843_s8 = smov 64   ;;  %s844_s18 = smov 4  }
  0x35   : > { %626 = dma.hbm_to_vmem [thread:$0]  (!%p973_p2), %s175_s29, 256, %s177_s4, %s165_s5, %s843_s8, %s843_s8, %s844_s18  }
  0x36   : > { %188 = sbr.rel (%p923_p8) target bundleno = 418 (0x1a2), region = 32  ;;  %s984_s11 = sand.u32 (!%p923_p8), 1, %s821_s13  }
  0x37   : > { %s583_s26 = sshll.u32 (!%p923_p8), %s984_s11, 4  ;;  %s191_s27 = scalar_lea.sflag (!%p923_p8), [#allocation3], %s984_s11 }
  0x38   : > { %s194_s30 = scalar_lea.vmem (!%p923_p8), [#allocation2], %s583_s26  ;;  %p1147_p12 = scmp.ne.s32.totalorder (!%p923_p8), %s1140_s22, 0 }
  0x3b   : > { %804 = dma.done.wait (%p1147_p12), %s191_s27, 256  }
  0x3c   : > { %806 = vsyncadd (%p1147_p12), %s191_s27, 4294967040 }
  0x3d   : > { %808 = dma.done.wait (%p903_p1), [#allocation6], 512  }
  0x3e   : > { %810 = vsyncadd (%p903_p1), [#allocation6], 4294966784  ;;  %v845_v0 = vmov 0   ;;  %v691_v1 = vld [vmem:[%s194_s30] sm:$0xff]   ;;  %v692_v2 = vld [vmem:[%s194_s30 + $0x8] sm:$0xff]   ;;  %vm291_vm0 = vcmask 261120   ;;  %v233_v15 = vlaneseq }
  0x3f   : > { %348 = vmatprep.mubr.bf16.mxu0 %v845_v0  ;;  %388 = vmatprep.mubr.bf16.mxu1 %v845_v0  ;;  %v693_v3 = vld [vmem:[#allocation5 + $0x14] ss:$8 sps:$4 sm:$0xff]   ;;  %v695_v4 = vld [vmem:[#allocation5 + $0x10] ss:$8 sps:$4 sm:$0xff]   ;;  %v696_v5 = vld [vmem:[#allocation5 + $0x4] ss:$8 sps:$4 sm:$0xff]  }
  0x40   : > { %255 = vxpose.xlu0.c.b16.start [1/2] (short) %v691_v1, 128  ;;  %328 = vmatprep.subr.bf16.mxu0 %v693_v3  ;;  %v698_v6 = vld [vmem:[#allocation5] ss:$8 sps:$4 sm:$0xff]   ;;  %v234_v16 = vshrl.u32 %v233_v15, 7  ;;  %s585_s24 = sshll.u32 %s984_s11, 8  ;;  %s606_s4 = sshll.u32 %s829_s15, 12 }
  0x41   : > { %607 = vmatprep.subr.bf16.mxu1 %v693_v3  ;;  %329 = vmatpush1.bf16.msra.mxu0 %v695_v4  ;;  %v231_v18 = vld [vmem:[%s1135_s2] sm:$0x3]  ;;  %s1013_s29 = scalar_lea.vmem [#allocation7], %s585_s24  ;;  %s1080_s7 = scalar_lea.hbm %s1136_s3, %s606_s4 }
  0x42   : > { %609 = vmatpush1.bf16.msra.mxu1 %v695_v4  ;;  %330 = vmatprep.subr.bf16.mxu0 %v696_v5  ;;  %v235_v17 = vsub.s32 0, %v234_v16  ;;  %v239_v19 = vsub.s32 1, %v234_v16  ;;  %s478_s21 = sshll.u32 %s1013_s29, 4  ;;  %s462_s15 = scalar_lea.sflag [#allocation4], %s984_s11  ;;  %s1082_s21 = int_to_ptr.vmem [resolvable:$true] %s478_s21 }
  0x43   : > { %608 = vmatprep.subr.bf16.mxu1 %v696_v5  ;;  %s753_s10 = scalar_lea.vmem %s1082_s21, 4096  ;;  %s846_s25 = smov [#allocation7]  }
  0x44   : > { %256 = vxpose.xlu0.c.b16.end [2/2] (short) %v692_v2, 128  ;;  %v1008_v20 = vrot.slane %v231_v18, %v235_v17  ;;  %v1010_v21 = vrot.slane %v231_v18, %v239_v19  ;;  %p754_p1 = scmp.ne.s32.totalorder %s1082_s21, %s753_s10  ;;  %s757_s8 = sshll.u32 %s846_s25, 4  ;;  %s758_s8 = int_to_ptr.vmem [resolvable:$false] %s757_s8 }
  0x45   : > { %331 = vmatpush1.bf16.msra.mxu0 %v698_v6  ;;  %s759_s18 = scalar_lea.vmem %s758_s8, 8192  ;;  %p760_p0 = scmp.lt.s32.totalorder %s1082_s21, %s758_s8 }
  0x46   : > { %610 = vmatpush1.bf16.msra.mxu1 %v698_v6  ;;  %p755_p8 = pnand %p754_p1, %p956_p13  ;;  %p761_p2 = scmp.lt.s32.totalorder %s759_s18, %s753_s10 }
  0x48   : > { %p756_p10 = pneg %p755_p8  ;;  %p762_p3 = por %p761_p2, %p760_p0 }
  0x4a   : > { %p763_p5 = pnand %p762_p3, %p756_p10 }
  0xa2   : > { %v263_v7 = vpop.trf.xlu0 }
  0xa3   : > { %592 = vmatmul.mubr.msk.bf16.vlgmr.msra.gmra.mxu0 %vm291_vm0, %v263_v7 }
  0xa4   : > { %358 = vmatprep.mubr.bf16.mxu0 %v845_v0 }
  0xa6   : > { %v264_v8 = vpop.trf.xlu0 }
  0xaa   : > { %v265_v9 = vpop.trf.xlu0 }
  0xab   : > { %593 = vmatmul.mubr.msk.bf16.gmra.mxu0 %vm291_vm0, %v264_v8 }
  0xac   : > { %368 = vmatprep.mubr.bf16.mxu0 %v845_v0 }
  0xae   : > { %v266_v10 = vpop.trf.xlu0 }
  0xb2   : > { %v267_v11 = vpop.trf.xlu0 }
  0xb3   : > { %594 = vmatmul.mubr.msk.bf16.gmra.mxu0 %vm291_vm0, %v265_v9  ;;  %596 = vmatmul.mubr.msk.bf16.vlgmr.msra.gmra.mxu1 %vm291_vm0, %v267_v11 }
  0xb4   : > { %378 = vmatprep.mubr.bf16.mxu0 %v845_v0  ;;  %398 = vmatprep.mubr.bf16.mxu1 %v845_v0 }
  0xb6   : > { %v268_v12 = vpop.trf.xlu0 }
  0xba   : > { %v269_v13 = vpop.trf.xlu0 }
  0xbb   : > { %595 = vmatmul.mubr.msk.bf16.gmra.mxu0 %vm291_vm0, %v266_v10  ;;  %597 = vmatmul.mubr.msk.bf16.gmra.mxu1 %vm291_vm0, %v268_v12 }
  0xbc   : > { %408 = vmatprep.mubr.bf16.mxu1 %v845_v0 }
  0xbe   : > { %v270_v14 = vpop.trf.xlu0 }
  0xc3   : > { %598 = vmatmul.mubr.msk.bf16.gmra.mxu1 %vm291_vm0, %v269_v13 }
  0xc4   : > { %418 = vmatprep.mubr.bf16.mxu1 %v845_v0 }
  0xcb   : > { %599 = vmatmul.mubr.msk.bf16.gmra.mxu1 %vm291_vm0, %v270_v14 }
 0x163   : > { %v350_v22 = vpop.f32.mrf.mxu0 }
 0x164   : > { %v351_v23 = vadd.f32 %v350_v22, %v1008_v20 }
 0x165   : > { %v352_v24 = vpop.f32.mrf.mxu0 }
 0x166   : > { %429 = vst [vmem:[%s1013_s29] sm:$0xff] %v351_v23  ;;  %v353_v25 = vadd.f32 %v352_v24, %v1010_v21 }
 0x167   : > { %v354_v26 = vpop.f32.mrf.mxu0 }
 0x168   : > { %430 = vst [vmem:[%s1013_s29 + $0x8] sm:$0xff] %v353_v25  ;;  %v355_v27 = vadd.f32 %v354_v26, %v1008_v20 }
 0x169   : > { %v356_v28 = vpop.f32.mrf.mxu0 }
 0x16a   : > { %431 = vst [vmem:[%s1013_s29 + $0x10] sm:$0xff] %v355_v27  ;;  %v357_v29 = vadd.f32 %v356_v28, %v1010_v21 }
 0x16b   : > { %v360_v30 = vpop.f32.mrf.mxu0 }
 0x16c   : > { %432 = vst [vmem:[%s1013_s29 + $0x18] sm:$0xff] %v357_v29  ;;  %v361_v31 = vadd.f32 %v360_v30, %v1008_v20 }
 0x16d   : > { %v362_v32 = vpop.f32.mrf.mxu0 }
 0x16e   : > { %433 = vst [vmem:[%s1013_s29 + $0x20] sm:$0xff] %v361_v31  ;;  %v363_v33 = vadd.f32 %v362_v32, %v1010_v21 }
 0x16f   : > { %v364_v34 = vpop.f32.mrf.mxu0 }
 0x170   : > { %434 = vst [vmem:[%s1013_s29 + $0x28] sm:$0xff] %v363_v33  ;;  %v365_v35 = vadd.f32 %v364_v34, %v1008_v20 }
 0x171   : > { %v366_v36 = vpop.f32.mrf.mxu0 }
 0x172   : > { %435 = vst [vmem:[%s1013_s29 + $0x30] sm:$0xff] %v365_v35  ;;  %v367_v37 = vadd.f32 %v366_v36, %v1010_v21 }
 0x173   : > { %v370_v38 = vpop.f32.mrf.mxu0  ;;  %v390_v39 = vpop.f32.mrf.mxu1 }
 0x174   : > { %436 = vst [vmem:[%s1013_s29 + $0x38] sm:$0xff] %v367_v37  ;;  %v371_v40 = vadd.f32 %v370_v38, %v1008_v20  ;;  %v391_v41 = vadd.f32 %v390_v39, %v1008_v20 }
 0x175   : > { %v372_v42 = vpop.f32.mrf.mxu0  ;;  %v392_v43 = vpop.f32.mrf.mxu1 }
 0x176   : > { %437 = vst [vmem:[%s1013_s29 + $0x40] sm:$0xff] %v371_v40  ;;  %445 = vst [vmem:[%s1013_s29 + $0x80] sm:$0xff] %v391_v41  ;;  %v373_v44 = vadd.f32 %v372_v42, %v1010_v21  ;;  %v393_v45 = vadd.f32 %v392_v43, %v1010_v21 }
 0x177   : > { %v374_v46 = vpop.f32.mrf.mxu0  ;;  %v394_v47 = vpop.f32.mrf.mxu1 }
 0x178   : > { %438 = vst [vmem:[%s1013_s29 + $0x48] sm:$0xff] %v373_v44  ;;  %446 = vst [vmem:[%s1013_s29 + $0x88] sm:$0xff] %v393_v45  ;;  %v375_v48 = vadd.f32 %v374_v46, %v1008_v20  ;;  %v395_v49 = vadd.f32 %v394_v47, %v1008_v20 }
 0x179   : > { %v376_v50 = vpop.f32.mrf.mxu0  ;;  %v396_v51 = vpop.f32.mrf.mxu1 }
 0x17a   : > { %439 = vst [vmem:[%s1013_s29 + $0x50] sm:$0xff] %v375_v48  ;;  %447 = vst [vmem:[%s1013_s29 + $0x90] sm:$0xff] %v395_v49  ;;  %v377_v52 = vadd.f32 %v376_v50, %v1010_v21  ;;  %v397_v53 = vadd.f32 %v396_v51, %v1010_v21 }
 0x17b   : > { %v380_v54 = vpop.f32.mrf.mxu0  ;;  %v400_v55 = vpop.f32.mrf.mxu1 }
 0x17c   : > { %440 = vst [vmem:[%s1013_s29 + $0x58] sm:$0xff] %v377_v52  ;;  %448 = vst [vmem:[%s1013_s29 + $0x98] sm:$0xff] %v397_v53  ;;  %v381_v56 = vadd.f32 %v380_v54, %v1008_v20  ;;  %v401_v57 = vadd.f32 %v400_v55, %v1008_v20 }
 0x17d   : > { %v382_v58 = vpop.f32.mrf.mxu0  ;;  %v402_v59 = vpop.f32.mrf.mxu1 }
 0x17e   : > { %441 = vst [vmem:[%s1013_s29 + $0x60] sm:$0xff] %v381_v56  ;;  %449 = vst [vmem:[%s1013_s29 + $0xa0] sm:$0xff] %v401_v57  ;;  %v383_v60 = vadd.f32 %v382_v58, %v1010_v21  ;;  %v403_v61 = vadd.f32 %v402_v59, %v1010_v21 }
 0x17f   : > { %v384_v62 = vpop.f32.mrf.mxu0  ;;  %v404_v63 = vpop.f32.mrf.mxu1 }
 0x180   : > { %442 = vst [vmem:[%s1013_s29 + $0x68] sm:$0xff] %v383_v60  ;;  %450 = vst [vmem:[%s1013_s29 + $0xa8] sm:$0xff] %v403_v61  ;;  %v385_v0 = vadd.f32 %v384_v62, %v1008_v20  ;;  %v405_v1 = vadd.f32 %v404_v63, %v1008_v20 }
 0x181   : > { %v386_v2 = vpop.f32.mrf.mxu0  ;;  %v406_v3 = vpop.f32.mrf.mxu1 }
 0x182   : > { %443 = vst [vmem:[%s1013_s29 + $0x70] sm:$0xff] %v385_v0  ;;  %451 = vst [vmem:[%s1013_s29 + $0xb0] sm:$0xff] %v405_v1  ;;  %v387_v4 = vadd.f32 %v386_v2, %v1010_v21  ;;  %v407_v5 = vadd.f32 %v406_v3, %v1010_v21 }
 0x183   : > { %v410_v6 = vpop.f32.mrf.mxu1 }
 0x184   : > { %444 = vst [vmem:[%s1013_s29 + $0x78] sm:$0xff] %v387_v4  ;;  %452 = vst [vmem:[%s1013_s29 + $0xb8] sm:$0xff] %v407_v5  ;;  %v411_v7 = vadd.f32 %v410_v6, %v1008_v20 }
 0x185   : > { %v412_v8 = vpop.f32.mrf.mxu1 }
 0x186   : > { %453 = vst [vmem:[%s1013_s29 + $0xc0] sm:$0xff] %v411_v7  ;;  %v413_v9 = vadd.f32 %v412_v8, %v1010_v21 }
 0x187   : > { %v414_v10 = vpop.f32.mrf.mxu1 }
 0x188   : > { %454 = vst [vmem:[%s1013_s29 + $0xc8] sm:$0xff] %v413_v9  ;;  %v415_v11 = vadd.f32 %v414_v10, %v1008_v20 }
 0x189   : > { %v416_v12 = vpop.f32.mrf.mxu1 }
 0x18a   : > { %455 = vst [vmem:[%s1013_s29 + $0xd0] sm:$0xff] %v415_v11  ;;  %v417_v13 = vadd.f32 %v416_v12, %v1010_v21 }
 0x18b   : > { %v420_v14 = vpop.f32.mrf.mxu1 }
 0x18c   : > { %456 = vst [vmem:[%s1013_s29 + $0xd8] sm:$0xff] %v417_v13  ;;  %v421_v15 = vadd.f32 %v420_v14, %v1008_v20 }
 0x18d   : > { %v422_v16 = vpop.f32.mrf.mxu1 }
 0x18e   : > { %457 = vst [vmem:[%s1013_s29 + $0xe0] sm:$0xff] %v421_v15  ;;  %v423_v17 = vadd.f32 %v422_v16, %v1010_v21 }
 0x18f   : > { %v424_v18 = vpop.f32.mrf.mxu1 }
 0x190   : > { %458 = vst [vmem:[%s1013_s29 + $0xe8] sm:$0xff] %v423_v17  ;;  %v425_v19 = vadd.f32 %v424_v18, %v1008_v20 }
 0x191   : > { %v426_v22 = vpop.f32.mrf.mxu1 }
 0x192   : > { %459 = vst [vmem:[%s1013_s29 + $0xf0] sm:$0xff] %v425_v19  ;;  %v427_v23 = vadd.f32 %v426_v22, %v1010_v21 }
 0x194   : > { %460 = vst [vmem:[%s1013_s29 + $0xf8] sm:$0xff] %v427_v23 }
 0x195   : > { %766 = shalt.err (!%p763_p5)
}
 0x196   : > { %s767_s26 = scalar_lea.hbm %s1080_s7, 4096  ;;  %s771_s20 = scalar_lea.hbm %s1136_s3, 8192 }
 0x197   : > { %p768_p7 = scmp.ne.s32.totalorder %s1080_s7, %s767_s26  ;;  %p772_p9 = scmp.lt.s32.totalorder %s1080_s7, %s1136_s3 }
 0x198   : > { %p773_p11 = scmp.lt.s32.totalorder %s771_s20, %s767_s26 }
 0x199   : > { %p769_p6 = pnand %p768_p7, %p956_p13 }
 0x19a   : > { %p774_p12 = por %p773_p11, %p772_p9 }
 0x19b   : > { %p770_p4 = pneg %p769_p6 }
 0x19d   : > { %p775_p1 = pnand %p774_p12, %p770_p4 }
 0x19f   : > { %778 = shalt.err (!%p775_p1)
}
 0x1a0   : > { %s847_s29 = smov 256   ;;  %s848_s4 = smov 16  }
 0x1a1   : > { %617 = dma.vmem_to_hbm [thread:$0]  (%p956_p13), %s1082_s21, 4096, %s1080_s7, %s462_s15, %s847_s29, %s847_s29, %s848_s4  }
 0x1a2 PF: > { %s493_s5 = sand.u32 1, %s817_s12   ;;  %p1148_p8 = scmp.ne.s32.totalorder %s1141_s23, 0 }
 0x1a3   : > { %p1149_p10 = scmp.ge.s32.totalorder %s837_s17, 2  ;;  %s494_s6 = scalar_lea.sflag [#allocation4], %s493_s5 }
 0x1a5   : > { %p628_p0 = pnand %p1149_p10, %p1148_p8 }
 0x1a7   : > { %p629_p2 = pneg %p628_p0 }
 0x1a9   : > { %812 = dma.done.wait (%p629_p2), %s494_s6, 4096  }
 0x1aa   : > { %814 = vsyncadd (%p629_p2), %s494_s6, 4294963200  ;;  %s20_s17 = sadd.s32 1, %s837_s17   ;;  %s1150_s12 = smov %s821_s13 }
 0x1ab   : > { %p17_p3 = scmp.ge.s32.totalorder %s20_s17, 4   ;;  %s1151_s13 = smov %s825_s14 }
 0x1ac   : > { %s1152_s14 = smov %s965_s19  ;;  %s1153_s15 = smov %s833_s16 }
 0x1ad   : > { %s1154_s16 = smov %s1156_s28  ;;  %19 = sbr.rel (!%p17_p3) target bundleno = 7 (0x7), region = 81 }
 0x1b2   :  { %499 = vsyncpa [#allocation3], 1 }
 0x1b3   :  { %501 = vsyncpa [#allocation3 + $0x1], 1 }
 0x1b4   :  { %502 = vsyncpa [#allocation6], 1 }
 0x1b5   :  { %503 = vsyncpa [#allocation4], 1 }
 0x1b6   :  { %505 = vsyncpa [#allocation4 + $0x1], 1 }

</bundles_post_ra>
